<compile_context>
chip_gen: v7x
topology: tpu7x:2x2x1
jax: 0.10.0
libtpu: 0.0.40
codegen_flags: <defaults>
</compile_context>

<pallas_src>
import functools

import jax
import jax.numpy as jnp
from jax.experimental import pallas as pl
from jax.experimental.pallas import tpu as pltpu

BN_EPS = 1e-5      # BatchNorm1d default eps
LANE = 128         # TPU lane width (last-dim tile)
TM = 128           # node-row tile size; raise to 512+ for large graphs
NEG_BIG = -1e9     # bias fill for padded output classes (exp() underflows to 0)


def _round_up(x, m):
    return ((x + m - 1) // m) * m


def _pad2(a, rows, cols):
    return jnp.pad(a, ((0, rows - a.shape[0]), (0, cols - a.shape[1])))


# --------------------------------------------------------------------------
# Generic row-tiled kernel:  out_tile = act(lhs_tile @ rhs + bias)
#   lhs     : (N, K)  tiled over rows (grid axis, "parallel")
#   rhs     : (K, M)  fully resident (index_map -> block 0)
#   bias    : (1, M)  fully resident
#   act     : "none" | "relu" | "log_softmax"   (static, trace-time)
# bf16 operands, f32 accumulation on the MXU.
# --------------------------------------------------------------------------
def _rowtile_matmul_kernel(activation, lhs_ref, rhs_ref, b_ref, o_ref):
    acc = jnp.dot(lhs_ref[...], rhs_ref[...],
                  preferred_element_type=jnp.float32)
    acc = acc + b_ref[...]
    if activation == "relu":
        acc = jnp.maximum(acc, 0.0)
    elif activation == "log_softmax":
        m = jnp.max(acc, axis=-1, keepdims=True)
        z = acc - m
        lse = jnp.log(jnp.sum(jnp.exp(z), axis=-1, keepdims=True))
        acc = z - lse
    o_ref[...] = acc.astype(o_ref.dtype)


def _rowtile_matmul(lhs, rhs, bias, activation, out_dtype, tm=TM):
    n, k = lhs.shape
    _, m = rhs.shape
    tm = min(tm, n)
    grid = (pl.cdiv(n, tm),)

    bytes_accessed = (lhs.size * lhs.dtype.itemsize
                      + rhs.size * rhs.dtype.itemsize
                      + bias.size * bias.dtype.itemsize
                      + n * m * jnp.dtype(out_dtype).itemsize)
    cost = pl.CostEstimate(
        flops=2 * n * k * m,
        transcendentals=(n * m if activation == "log_softmax" else 0),
        bytes_accessed=int(bytes_accessed))

    return pl.pallas_call(
        functools.partial(_rowtile_matmul_kernel, activation),
        out_shape=jax.ShapeDtypeStruct((n, m), out_dtype),
        grid=grid,
        in_specs=[pl.BlockSpec((tm, k), lambda i: (i, 0)),   # row-tiled lhs
                  pl.BlockSpec((k, m), lambda i: (0, 0)),    # resident rhs
                  pl.BlockSpec((1, m), lambda i: (0, 0))],   # resident bias
        out_specs=pl.BlockSpec((tm, m), lambda i: (i, 0)),
        compiler_params=pltpu.CompilerParams(
            dimension_semantics=("parallel",),
            vmem_limit_bytes=64 << 20),
        cost_estimate=cost,
    )(lhs, rhs, bias)


# --------------------------------------------------------------------------
# One GCN layer:  act(A_norm @ (x @ W') + b')   (BN already folded into W', b')
# Association chosen so the N^2 matmul runs on the narrower feature width.
# --------------------------------------------------------------------------
def _gcn_layer(a, x, w, b, activation, out_dtype):
    in_w = x.shape[1]
    out_w = w.shape[1]
    if out_w <= in_w:
        # transform first (PyG order): N^2 matmul at width out_w
        xw = _rowtile_matmul(x, w, jnp.zeros((1, out_w), jnp.float32),
                             "none", jnp.bfloat16)
        return _rowtile_matmul(a, xw, b, activation, out_dtype)
    else:
        # aggregate first: N^2 matmul at width in_w
        ax = _rowtile_matmul(a, x, jnp.zeros((1, in_w), jnp.float32),
                             "none", jnp.bfloat16)
        return _rowtile_matmul(ax, w, b, activation, out_dtype)


# --------------------------------------------------------------------------
# Parameter init (GCNConv: glorot weight, zero bias; BN: affine + running stats)
# --------------------------------------------------------------------------
def init_gcn_node_params(key, in_channels, hidden_channels, out_channels,
                         num_layers):
    def glorot_linear(k, fan_in, fan_out):
        bound = float(jnp.sqrt(6.0 / (fan_in + fan_out)))
        w = jax.random.uniform(k, (fan_in, fan_out), jnp.float32, -bound, bound)
        b = jnp.zeros((1, fan_out), jnp.float32)
        return w, b

    params = {"convs": [], "bns": []}
    keys = jax.random.split(key, 2 * num_layers + 1)
    ki = 0
    in_dims = [in_channels] + [hidden_channels] * (num_layers - 2)
    for d_in in in_dims:
        w, b = glorot_linear(keys[ki], d_in, hidden_channels); ki += 1
        params["convs"].append((w, b))
        kg, kb = jax.random.split(keys[ki]); ki += 1
        gamma = 1.0 + 0.1 * jax.random.normal(kg, (1, hidden_channels), jnp.float32)
        beta = 0.1 * jax.random.normal(kb, (1, hidden_channels), jnp.float32)
        running_mean = jnp.zeros((1, hidden_channels), jnp.float32)
        running_var = jnp.ones((1, hidden_channels), jnp.float32)
        params["bns"].append((gamma, beta, running_mean, running_var))
    wf, bf = glorot_linear(keys[ki], hidden_channels, out_channels)
    params["final"] = (wf, bf)
    return params


# --------------------------------------------------------------------------
# Per-graph: dense symmetrically-normalized adjacency, padded + bf16.
# Built ONCE per graph (hoisted off the per-inference path).
# --------------------------------------------------------------------------
def build_norm_adj(edge_index, num_nodes):
    src, dst = edge_index[0], edge_index[1]
    a = jnp.zeros((num_nodes, num_nodes), jnp.float32).at[dst, src].add(1.0)
    a = a + jnp.eye(num_nodes, dtype=jnp.float32)
    deg = jnp.sum(a, axis=1)
    dinv = jnp.where(deg > 0.0, jax.lax.rsqrt(deg), 0.0)
    a_norm = dinv[:, None] * a * dinv[None, :]
    n_pad = _round_up(num_nodes, LANE)
    return _pad2(a_norm, n_pad, n_pad).astype(jnp.bfloat16)


# --------------------------------------------------------------------------
# Per-model: fold BN into conv weights/bias, pad to lane-dense shapes, cast bf16.
# --------------------------------------------------------------------------
def prepare_params(params, in_channels):
    hid_c = params["convs"][0][0].shape[1]
    out_c = params["final"][0].shape[1]
    cin_pad = _round_up(in_channels, LANE)
    h_pad = _round_up(hid_c, LANE)
    out_pad = _round_up(out_c, LANE)

    layers = []
    for li, ((w, b), (gamma, beta, rm, rv)) in enumerate(zip(params["convs"],
                                                             params["bns"])):
        scale = gamma / jnp.sqrt(rv + BN_EPS)          # (1, hid)
        shift = beta - rm * scale
        w_fold = w * scale                             # BN folded into columns
        b_fold = b * scale + shift
        in_pad = cin_pad if li == 0 else h_pad
        layers.append((_pad2(w_fold, in_pad, h_pad).astype(jnp.bfloat16),
                       _pad2(b_fold, 1, h_pad)))       # bias stays f32

    wf, bf = params["final"]
    wf_pad = _pad2(wf, h_pad, out_pad).astype(jnp.bfloat16)
    bf_pad = jnp.full((1, out_pad), NEG_BIG, jnp.float32).at[:, :out_c].set(bf[0])
    return {"layers": layers, "final": (wf_pad, bf_pad)}


# --------------------------------------------------------------------------
# Forward pass (jit this): chains one GCN layer per pair of pallas_calls.
# Returns the padded (N_pad, out_pad) log-softmax; caller slices real rows/cols.
# --------------------------------------------------------------------------
def gcn_node_forward(prepared, a_pad, x):
    n_pad = a_pad.shape[0]
    cin_pad = prepared["layers"][0][0].shape[0]
    h = _pad2(x, n_pad, cin_pad).astype(jnp.bfloat16)

    for w, b in prepared["layers"]:
        h = _gcn_layer(a_pad, h, w, b, "relu", jnp.bfloat16)
        # TODO(synk): F.dropout with training=True (stochastic mask) not emitted;
        # eval-mode dropout is the identity so nothing is needed here.

    wf, bf = prepared["final"]
    return _gcn_layer(a_pad, h, wf, bf, "log_softmax", jnp.float32)


# --------------------------------------------------------------------------
# Demo
# --------------------------------------------------------------------------
if __name__ == "__main__":
    NUM_NODES = 64
    NUM_EDGES = 256
    IN_CHANNELS = 16
    HIDDEN_CHANNELS = 32
    OUT_CHANNELS = 8
    NUM_LAYERS = 3
    DROPOUT = 0.5  # unused in eval mode

    key = jax.random.PRNGKey(0)
    k_x, k_src, k_dst, k_params = jax.random.split(key, 4)

    x = jax.random.normal(k_x, (NUM_NODES, IN_CHANNELS), jnp.float32)
    edge_index = jnp.stack([
        jax.random.randint(k_src, (NUM_EDGES,), 0, NUM_NODES, jnp.int32),
        jax.random.randint(k_dst, (NUM_EDGES,), 0, NUM_NODES, jnp.int32),
    ], axis=0)

    params = init_gcn_node_params(k_params, IN_CHANNELS, HIDDEN_CHANNELS,
                                  OUT_CHANNELS, NUM_LAYERS)

    # per-graph / per-model preprocessing (off the per-inference path)
    a_pad = build_norm_adj(edge_index, NUM_NODES)
    prepared = prepare_params(params, IN_CHANNELS)

    fwd = jax.jit(gcn_node_forward)
    out_padded = jax.block_until_ready(fwd(prepared, a_pad, x))
    out = out_padded[:NUM_NODES, :OUT_CHANNELS]

    assert out.shape == (NUM_NODES, OUT_CHANNELS)
    assert bool(jnp.all(jnp.isfinite(out)))
    # log_softmax rows should exponentiate-and-sum to ~1
    row_sums = jnp.sum(jnp.exp(out), axis=-1)
    assert bool(jnp.all(jnp.abs(row_sums - 1.0) < 1e-3))

    print("KERNEL_OK")
</pallas_src>

<mosaic_0001>
module attributes {stable_mosaic.version = 11 : i64} {
  func.func @_rowtile_matmul_kernel(%arg0: i32, %arg1: memref<128x128xbf16, #tpu.memory_space<vmem>>, %arg2: memref<128x128xbf16, #tpu.memory_space<vmem>>, %arg3: memref<1x128xf32, #tpu.memory_space<vmem>>, %arg4: memref<128x128xf32, #tpu.memory_space<vmem>>) attributes {dimension_semantics = [#tpu.dimension_semantics<parallel>], iteration_bounds = array<i64: 1>, scalar_prefetch = 0 : i64, scratch_operands = 0 : i64, tpu.core_type = #tpu.core_type<tc>, window_params = [{transform_indices = @transform_0, window_bounds = array<i64: 128, 128>}, {pipeline_mode = #tpu.pipeline_mode<synchronous>, transform_indices = @transform_1, window_bounds = array<i64: 128, 128>}, {pipeline_mode = #tpu.pipeline_mode<synchronous>, transform_indices = @transform_2, window_bounds = array<i64: 1, 128>}, {transform_indices = @transform_3, window_bounds = array<i64: 128, 128>}]} {
    %c0 = arith.constant 0 : index
    %c0_0 = arith.constant 0 : index
    %0 = vector.load %arg1[%c0, %c0_0] : memref<128x128xbf16, #tpu.memory_space<vmem>>, vector<128x128xbf16>
    %c0_1 = arith.constant 0 : index
    %c0_2 = arith.constant 0 : index
    %1 = vector.load %arg2[%c0_1, %c0_2] : memref<128x128xbf16, #tpu.memory_space<vmem>>, vector<128x128xbf16>
    %cst = arith.constant dense<0.000000e+00> : vector<128x128xf32>
    %2 = tpu.matmul %0, %1, %cst {dimension_numbers = #tpu.dot_dimension_numbers<[1], [0], [0], [1], [0, 0, 1, 1], [], []>} : vector<128x128xbf16>, vector<128x128xbf16>, vector<128x128xf32> -> vector<128x128xf32>
    %c0_3 = arith.constant 0 : index
    %c0_4 = arith.constant 0 : index
    %3 = vector.load %arg3[%c0_3, %c0_4] : memref<1x128xf32, #tpu.memory_space<vmem>>, vector<1x128xf32>
    %4 = vector.broadcast %3 : vector<1x128xf32> to vector<128x128xf32>
    %5 = arith.addf %2, %4 : vector<128x128xf32>
    %cst_5 = arith.constant dense<0xFF800000> : vector<128xf32>
    %6 = vector.multi_reduction <maximumf>, %5, %cst_5 [1] : vector<128x128xf32> to vector<128xf32>
    %7 = vector.shape_cast %6 : vector<128xf32> to vector<128x1xf32>
    %8 = vector.broadcast %7 : vector<128x1xf32> to vector<128x128xf32>
    %9 = arith.subf %5, %8 : vector<128x128xf32>
    %10 = math.exp %9 : vector<128x128xf32>
    %cst_6 = arith.constant dense<0.000000e+00> : vector<128xf32>
    %11 = vector.multi_reduction <add>, %10, %cst_6 [1] : vector<128x128xf32> to vector<128xf32>
    %12 = vector.shape_cast %11 : vector<128xf32> to vector<128x1xf32>
    %13 = math.log %12 : vector<128x1xf32>
    %14 = vector.broadcast %13 : vector<128x1xf32> to vector<128x128xf32>
    %15 = arith.subf %9, %14 : vector<128x128xf32>
    %c0_7 = arith.constant 0 : index
    %c0_8 = arith.constant 0 : index
    %16 = vector.load %arg4[%c0_7, %c0_8] : memref<128x128xf32, #tpu.memory_space<vmem>>, vector<128x128xf32>
    tpu.vector_store %arg4[%c0_7, %c0_8], %15 {strides = array<i32>} : memref<128x128xf32, #tpu.memory_space<vmem>>, vector<128x128xf32>,
    return
  }
  func.func @transform_0(%arg0: i32) -> (i32, i32) {
    %c0_i32 = arith.constant 0 : i32
    %c0_i32_0 = arith.constant 0 : i32
    return %arg0, %c0_i32 : i32, i32
  }
  func.func @transform_1(%arg0: i32) -> (i32, i32) {
    %c0_i32 = arith.constant 0 : i32
    %c0_i32_0 = arith.constant 0 : i32
    %c0_i32_1 = arith.constant 0 : i32
    return %c0_i32, %c0_i32_0 : i32, i32
  }
  func.func @transform_2(%arg0: i32) -> (i32, i32) {
    %c0_i32 = arith.constant 0 : i32
    %c0_i32_0 = arith.constant 0 : i32
    %c0_i32_1 = arith.constant 0 : i32
    return %c0_i32, %c0_i32_0 : i32, i32
  }
  func.func @transform_3(%arg0: i32) -> (i32, i32) {
    %c0_i32 = arith.constant 0 : i32
    %c0_i32_0 = arith.constant 0 : i32
    return %arg0, %c0_i32 : i32, i32
  }
}

module attributes {stable_mosaic.version = 11 : i64} {
  func.func @_rowtile_matmul_kernel(%arg0: i32, %arg1: memref<128x128xbf16, #tpu.memory_space<vmem>>, %arg2: memref<128x128xbf16, #tpu.memory_space<vmem>>, %arg3: memref<1x128xf32, #tpu.memory_space<vmem>>, %arg4: memref<128x128xbf16, #tpu.memory_space<vmem>>) attributes {dimension_semantics = [#tpu.dimension_semantics<parallel>], iteration_bounds = array<i64: 1>, scalar_prefetch = 0 : i64, scratch_operands = 0 : i64, tpu.core_type = #tpu.core_type<tc>, window_params = [{transform_indices = @transform_0, window_bounds = array<i64: 128, 128>}, {pipeline_mode = #tpu.pipeline_mode<synchronous>, transform_indices = @transform_1, window_bounds = array<i64: 128, 128>}, {pipeline_mode = #tpu.pipeline_mode<synchronous>, transform_indices = @transform_2, window_bounds = array<i64: 1, 128>}, {transform_indices = @transform_3, window_bounds = array<i64: 128, 128>}]} {
    %c0 = arith.constant 0 : index
    %c0_0 = arith.constant 0 : index
    %0 = vector.load %arg1[%c0, %c0_0] : memref<128x128xbf16, #tpu.memory_space<vmem>>, vector<128x128xbf16>
    %c0_1 = arith.constant 0 : index
    %c0_2 = arith.constant 0 : index
    %1 = vector.load %arg2[%c0_1, %c0_2] : memref<128x128xbf16, #tpu.memory_space<vmem>>, vector<128x128xbf16>
    %cst = arith.constant dense<0.000000e+00> : vector<128x128xf32>
    %2 = tpu.matmul %0, %1, %cst {dimension_numbers = #tpu.dot_dimension_numbers<[1], [0], [0], [1], [0, 0, 1, 1], [], []>} : vector<128x128xbf16>, vector<128x128xbf16>, vector<128x128xf32> -> vector<128x128xf32>
    %c0_3 = arith.constant 0 : index
    %c0_4 = arith.constant 0 : index
    %3 = vector.load %arg3[%c0_3, %c0_4] : memref<1x128xf32, #tpu.memory_space<vmem>>, vector<1x128xf32>
    %4 = vector.broadcast %3 : vector<1x128xf32> to vector<128x128xf32>
    %5 = arith.addf %2, %4 : vector<128x128xf32>
    %cst_5 = arith.constant 0.000000e+00 : f32
    %6 = vector.broadcast %cst_5 : f32 to vector<128x128xf32>
    %7 = arith.maximumf %5, %6 : vector<128x128xf32>
    %8 = arith.truncf %7 : vector<128x128xf32> to vector<128x128xbf16>
    %c0_6 = arith.constant 0 : index
    %c0_7 = arith.constant 0 : index
    %9 = vector.load %arg4[%c0_6, %c0_7] : memref<128x128xbf16, #tpu.memory_space<vmem>>, vector<128x128xbf16>
    tpu.vector_store %arg4[%c0_6, %c0_7], %8 {strides = array<i32>} : memref<128x128xbf16, #tpu.memory_space<vmem>>, vector<128x128xbf16>,
    return
  }
  func.func @transform_0(%arg0: i32) -> (i32, i32) {
    %c0_i32 = arith.constant 0 : i32
    %c0_i32_0 = arith.constant 0 : i32
    return %arg0, %c0_i32 : i32, i32
  }
  func.func @transform_1(%arg0: i32) -> (i32, i32) {
    %c0_i32 = arith.constant 0 : i32
    %c0_i32_0 = arith.constant 0 : i32
    %c0_i32_1 = arith.constant 0 : i32
    return %c0_i32, %c0_i32_0 : i32, i32
  }
  func.func @transform_2(%arg0: i32) -> (i32, i32) {
    %c0_i32 = arith.constant 0 : i32
    %c0_i32_0 = arith.constant 0 : i32
    %c0_i32_1 = arith.constant 0 : i32
    return %c0_i32, %c0_i32_0 : i32, i32
  }
  func.func @transform_3(%arg0: i32) -> (i32, i32) {
    %c0_i32 = arith.constant 0 : i32
    %c0_i32_0 = arith.constant 0 : i32
    return %arg0, %c0_i32 : i32, i32
  }
}

module attributes {stable_mosaic.version = 11 : i64} {
  func.func @_rowtile_matmul_kernel(%arg0: i32, %arg1: memref<128x128xbf16, #tpu.memory_space<vmem>>, %arg2: memref<128x128xbf16, #tpu.memory_space<vmem>>, %arg3: memref<1x128xf32, #tpu.memory_space<vmem>>, %arg4: memref<128x128xbf16, #tpu.memory_space<vmem>>) attributes {dimension_semantics = [#tpu.dimension_semantics<parallel>], iteration_bounds = array<i64: 1>, scalar_prefetch = 0 : i64, scratch_operands = 0 : i64, tpu.core_type = #tpu.core_type<tc>, window_params = [{transform_indices = @transform_0, window_bounds = array<i64: 128, 128>}, {pipeline_mode = #tpu.pipeline_mode<synchronous>, transform_indices = @transform_1, window_bounds = array<i64: 128, 128>}, {pipeline_mode = #tpu.pipeline_mode<synchronous>, transform_indices = @transform_2, window_bounds = array<i64: 1, 128>}, {transform_indices = @transform_3, window_bounds = array<i64: 128, 128>}]} {
    %c0 = arith.constant 0 : index
    %c0_0 = arith.constant 0 : index
    %0 = vector.load %arg1[%c0, %c0_0] : memref<128x128xbf16, #tpu.memory_space<vmem>>, vector<128x128xbf16>
    %c0_1 = arith.constant 0 : index
    %c0_2 = arith.constant 0 : index
    %1 = vector.load %arg2[%c0_1, %c0_2] : memref<128x128xbf16, #tpu.memory_space<vmem>>, vector<128x128xbf16>
    %cst = arith.constant dense<0.000000e+00> : vector<128x128xf32>
    %2 = tpu.matmul %0, %1, %cst {dimension_numbers = #tpu.dot_dimension_numbers<[1], [0], [0], [1], [0, 0, 1, 1], [], []>} : vector<128x128xbf16>, vector<128x128xbf16>, vector<128x128xf32> -> vector<128x128xf32>
    %c0_3 = arith.constant 0 : index
    %c0_4 = arith.constant 0 : index
    %3 = vector.load %arg3[%c0_3, %c0_4] : memref<1x128xf32, #tpu.memory_space<vmem>>, vector<1x128xf32>
    %4 = vector.broadcast %3 : vector<1x128xf32> to vector<128x128xf32>
    %5 = arith.addf %2, %4 : vector<128x128xf32>
    %6 = arith.truncf %5 : vector<128x128xf32> to vector<128x128xbf16>
    %c0_5 = arith.constant 0 : index
    %c0_6 = arith.constant 0 : index
    %7 = vector.load %arg4[%c0_5, %c0_6] : memref<128x128xbf16, #tpu.memory_space<vmem>>, vector<128x128xbf16>
    tpu.vector_store %arg4[%c0_5, %c0_6], %6 {strides = array<i32>} : memref<128x128xbf16, #tpu.memory_space<vmem>>, vector<128x128xbf16>,
    return
  }
  func.func @transform_0(%arg0: i32) -> (i32, i32) {
    %c0_i32 = arith.constant 0 : i32
    %c0_i32_0 = arith.constant 0 : i32
    return %arg0, %c0_i32 : i32, i32
  }
  func.func @transform_1(%arg0: i32) -> (i32, i32) {
    %c0_i32 = arith.constant 0 : i32
    %c0_i32_0 = arith.constant 0 : i32
    %c0_i32_1 = arith.constant 0 : i32
    return %c0_i32, %c0_i32_0 : i32, i32
  }
  func.func @transform_2(%arg0: i32) -> (i32, i32) {
    %c0_i32 = arith.constant 0 : i32
    %c0_i32_0 = arith.constant 0 : i32
    %c0_i32_1 = arith.constant 0 : i32
    return %c0_i32, %c0_i32_0 : i32, i32
  }
  func.func @transform_3(%arg0: i32) -> (i32, i32) {
    %c0_i32 = arith.constant 0 : i32
    %c0_i32_0 = arith.constant 0 : i32
    return %arg0, %c0_i32 : i32, i32
  }
}

</mosaic_0001>

<bundles_post_ra>
// kernel: gcn_node_forward.11
= control target key start
LH: loop header
LB: loop body
LE: loop exit
PB: predicated region body
PF: predicated region fallthrough
CT: control target
= control target key end

     0   :  { %8 = vsyncpa [#allocation3], 0  ;;  %s907_s0 = inlined_call_operand.hbm [shape: bf16[128,128], index: 0, kind: input, shape index: {}]   ;;  %s908_s1 = inlined_call_operand.hbm [shape: bf16[128,128], index: 1, kind: input, shape index: {}]   ;;  %s909_s2 = inlined_call_operand.hbm [shape: f32[1,128], index: 2, kind: input, shape index: {}]   ;;  %s910_s3 = inlined_call_operand.hbm [shape: f32[128,128], index: 3, kind: output, shape index: {}]  }
   0x1   :  { %9 = vsyncpa [#allocation6], 0 }
   0x2   :  { %10 = vsyncpa [#allocation4], 0  ;;  %s744_s12 = smov [#allocation5]   ;;  %s745_s14 = smov [#allocation2]  }
   0x3   :  { %s28_s13 = sshll.u32 %s744_s12, 4  ;;  %s16_s15 = sshll.u32 %s745_s14, 4  ;;  %s29_s13 = int_to_ptr.vmem [resolvable:$true] %s28_s13  ;;  %s772_s15 = int_to_ptr.vmem [resolvable:$true] %s16_s15 }
   0x4   :  { %s650_s18 = scalar_lea.hbm %s908_s1, 1024 }
   0x5   :  { %p651_p0 = scmp.ne.s32.totalorder %s908_s1, %s650_s18  ;;  %p654_p1 = scmp.lt.u32.totalorder %s650_s18, %s908_s1 }
   0x7   :  { %p656_p2 = pnand %p654_p1, %p651_p0 }
   0x9   :  { %659 = shalt.err (!%p656_p2)
}
   0xa   :  { %s660_s23 = scalar_lea.vmem %s29_s13, 1024  ;;  %p665_p4 = scmp.lt.s32.totalorder %s29_s13, %s29_s13 }
   0xb   :  { %p661_p3 = scmp.ne.s32.totalorder %s29_s13, %s660_s23  ;;  %p666_p5 = scmp.lt.s32.totalorder %s660_s23, %s660_s23 }
   0xd   :  { %p667_p6 = por %p666_p5, %p665_p4 }
   0xf   :  { %p668_p7 = pnand %p667_p6, %p661_p3 }
  0x11   :  { %671 = shalt.err (!%p668_p7)
}
  0x12   :  { %s746_s24 = smov 64   ;;  %s747_s25 = smov 4  }
  0x13   :  { %34 = dma.hbm_to_vmem [thread:$0]  %s908_s1, 1024, %s29_s13, [#allocation6], %s746_s24, %s746_s24, %s747_s25  }
  0x14   :  { %s672_s30 = scalar_lea.hbm %s907_s0, 1024 }
  0x15   :  { %p673_p8 = scmp.ne.s32.totalorder %s907_s0, %s672_s30  ;;  %p676_p9 = scmp.lt.u32.totalorder %s672_s30, %s907_s0 }
  0x17   :  { %p678_p10 = pnand %p676_p9, %p673_p8 }
  0x19   :  { %681 = shalt.err (!%p678_p10)
}
  0x1a   :  { %s682_s8 = scalar_lea.vmem %s772_s15, 1024  ;;  %p687_p12 = scmp.lt.s32.totalorder %s772_s15, %s772_s15 }
  0x1b   :  { %p683_p11 = scmp.ne.s32.totalorder %s772_s15, %s682_s8  ;;  %p688_p13 = scmp.lt.s32.totalorder %s682_s8, %s682_s8 }
  0x1d   :  { %p689_p0 = por %p688_p13, %p687_p12 }
  0x1f   :  { %p690_p1 = pnand %p689_p0, %p683_p11 }
  0x21   :  { %693 = shalt.err (!%p690_p1)
}
  0x22   :  { %22 = dma.hbm_to_vmem [thread:$0]  %s907_s0, 1024, %s772_s15, [#allocation3], %s746_s24, %s746_s24, %s747_s25  }
  0x23   :  { %s748_s10 = smov [#allocation7]   ;;  %s694_s14 = scalar_lea.hbm %s909_s2, 16 }
  0x24   :  { %s41_s11 = sshll.u32 %s748_s10, 4  ;;  %p695_p2 = scmp.ne.s32.totalorder %s909_s2, %s694_s14  ;;  %s42_s11 = int_to_ptr.vmem [resolvable:$true] %s41_s11 }
  0x25   :  { %p698_p3 = scmp.lt.u32.totalorder %s694_s14, %s909_s2 }
  0x27   :  { %p700_p4 = pnand %p698_p3, %p695_p2 }
  0x29   :  { %703 = shalt.err (!%p700_p4)
}
  0x2a   :  { %s704_s20 = scalar_lea.vmem %s42_s11, 16  ;;  %s708_s0 = scalar_lea.vmem %s42_s11, 32 }
  0x2b   :  { %p705_p5 = scmp.ne.s32.totalorder %s42_s11, %s704_s20  ;;  %p709_p6 = scmp.lt.s32.totalorder %s42_s11, %s42_s11 }
  0x2c   :  { %p710_p7 = scmp.lt.s32.totalorder %s708_s0, %s704_s20 }
  0x2e   :  { %p711_p8 = por %p710_p7, %p709_p6 }
  0x30   :  { %p712_p9 = pnand %p711_p8, %p705_p5 }
  0x32   :  { %715 = shalt.err (!%p712_p9)
}
  0x33   :  { %44 = dma.hbm_to_vmem [thread:$0]  %s909_s2, 16, %s42_s11, [#allocation6]  }
  0x34   :  { %738 = dma.done.wait [#allocation3], 1024  }
  0x35   :  { %739 = vsyncadd [#allocation3], 4294966272 }
  0x36   :  { %740 = dma.done.wait [#allocation6], 1040  }
  0x37   :  { %741 = vsyncadd [#allocation6], 4294966256  ;;  %v570_v0 = vld [vmem:[#allocation5] sm:$0xff]   ;;  %v571_v1 = vld [vmem:[#allocation5 + $0x8] sm:$0xff]   ;;  %s749_s2 = smov [#allocation8]  }
  0x38   :  { %514 = vmatprep.subr.bf16.mxu0 %v570_v0  ;;  %546 = vmatprep.subr.bf16.mxu1 %v570_v0  ;;  %v572_v2 = vld [vmem:[#allocation5 + $0x10] sm:$0xff]   ;;  %v573_v3 = vld [vmem:[#allocation5 + $0x18] sm:$0xff]   ;;  %v578_v4 = vld [vmem:[#allocation2] sm:$0xff]   ;;  %s468_s22 = sshll.u32 %s749_s2, 4  ;;  %s469_s22 = int_to_ptr.vmem [resolvable:$true] %s468_s22 }
  0x39   :  { %515 = vmatpush3.bf16.msra.mxu0 %v570_v0  ;;  %554 = vmatpush3.bf16.msra.mxu1 %v570_v0  ;;  %v579_v5 = vld [vmem:[#allocation2 + $0x20] sm:$0xff]   ;;  %v575_v7 = vld [vmem:[#allocation5 + $0x28] sm:$0xff]   ;;  %v576_v8 = vld [vmem:[#allocation5 + $0x30] sm:$0xff]   ;;  %s716_s23 = scalar_lea.vmem %s469_s22, 2048  ;;  %p721_p11 = scmp.lt.s32.totalorder %s469_s22, %s469_s22 }
  0x3a   :  { %516 = vmatprep.subr.bf16.mxu0 %v571_v1  ;;  %547 = vmatprep.subr.bf16.mxu1 %v571_v1  ;;  %v574_v6 = vld [vmem:[#allocation5 + $0x20] sm:$0xff]   ;;  %v577_v9 = vld [vmem:[#allocation5 + $0x38] sm:$0xff]   ;;  %v580_v10 = vld [vmem:[#allocation2 + $0x8] sm:$0xff]   ;;  %p717_p10 = scmp.ne.s32.totalorder %s469_s22, %s716_s23  ;;  %p722_p12 = scmp.lt.s32.totalorder %s716_s23, %s716_s23 }
  0x3b   :  { %530 = vmatprep.mubr.bf16.mxu0 %v578_v4  ;;  %538 = vmatprep.mubr.bf16.mxu1 %v579_v5  ;;  %v581_v11 = vld [vmem:[#allocation2 + $0x28] sm:$0xff]   ;;  %v582_v12 = vld [vmem:[#allocation2 + $0x10] sm:$0xff]   ;;  %v583_v14 = vld [vmem:[#allocation2 + $0x18] sm:$0xff]  }
  0x3c   :  { %v584_v13 = vld [vmem:[#allocation2 + $0x30] sm:$0xff]   ;;  %v585_v15 = vld [vmem:[#allocation2 + $0x38] sm:$0xff]   ;;  %v481_v16 = vld [vmem:[#allocation7] ss:$0 sm:$0xff]  ;;  %p723_p13 = por %p722_p12, %p721_p11 }
  0x3d   :  { %517 = vmatpush3.bf16.msra.mxu0 %v571_v1  ;;  %555 = vmatpush3.bf16.msra.mxu1 %v571_v1 }
  0x3e   :  { %518 = vmatprep.subr.bf16.mxu0 %v572_v2  ;;  %548 = vmatprep.subr.bf16.mxu1 %v572_v2  ;;  %p724_p0 = pnand %p723_p13, %p717_p10 }
  0x41   :  { %519 = vmatpush3.bf16.msra.mxu0 %v572_v2  ;;  %556 = vmatpush3.bf16.msra.mxu1 %v572_v2 }
  0x42   :  { %520 = vmatprep.subr.bf16.mxu0 %v573_v3  ;;  %549 = vmatprep.subr.bf16.mxu1 %v573_v3 }
  0x45   :  { %521 = vmatpush3.bf16.msra.mxu0 %v573_v3  ;;  %557 = vmatpush3.bf16.msra.mxu1 %v573_v3 }
  0x46   :  { %522 = vmatprep.subr.bf16.mxu0 %v574_v6  ;;  %550 = vmatprep.subr.bf16.mxu1 %v574_v6 }
  0x49   :  { %523 = vmatpush3.bf16.msra.mxu0 %v574_v6  ;;  %558 = vmatpush3.bf16.msra.mxu1 %v574_v6 }
  0x4a   :  { %524 = vmatprep.subr.bf16.mxu0 %v575_v7  ;;  %551 = vmatprep.subr.bf16.mxu1 %v575_v7 }
  0x4d   :  { %525 = vmatpush3.bf16.msra.mxu0 %v575_v7  ;;  %559 = vmatpush3.bf16.msra.mxu1 %v575_v7 }
  0x4e   :  { %526 = vmatprep.subr.bf16.mxu0 %v576_v8  ;;  %552 = vmatprep.subr.bf16.mxu1 %v576_v8 }
  0x51   :  { %527 = vmatpush3.bf16.msra.mxu0 %v576_v8  ;;  %560 = vmatpush3.bf16.msra.mxu1 %v576_v8 }
  0x52   :  { %528 = vmatprep.subr.bf16.mxu0 %v577_v9  ;;  %553 = vmatprep.subr.bf16.mxu1 %v577_v9 }
  0x55   :  { %529 = vmatpush3.bf16.msra.mxu0 %v577_v9  ;;  %561 = vmatpush3.bf16.msra.mxu1 %v577_v9 }
  0x58   :  { %531 = vmatmul.mubr.bf16.vlgmr.msra.gmra.mrb[0].mxu0 %v580_v10  ;;  %539 = vmatmul.mubr.bf16.vlgmr.msra.gmra.mrb[0].mxu1 %v581_v11 }
  0x59   :  { %534 = vmatprep.mubr.bf16.mxu0 %v582_v12  ;;  %542 = vmatprep.mubr.bf16.mxu1 %v584_v13 }
  0x60   :  { %535 = vmatmul.mubr.bf16.gmra.mrb[4].mxu0 %v583_v14  ;;  %543 = vmatmul.mubr.bf16.gmra.mrb[4].mxu1 %v585_v15 }
 0x12b   :  { %v532_v17 = vpop.f32.mrb[0].mxu0  ;;  %v540_v18 = vpop.f32.mrb[0].mxu1 }
 0x12c   :  { %v233_v19 = vadd.f32 %v532_v17, %v481_v16  ;;  %v265_v20 = vadd.f32 %v540_v18, %v481_v16  ;;  %v224_v21 = vpop.f32.mrb[1].mxu0  ;;  %v256_v22 = vpop.f32.mrb[1].mxu1 }
 0x12d   :  { %v533_v23 = vpop.f32.mrb[2].mxu0  ;;  %v541_v24 = vpop.f32.mrb[2].mxu1  ;;  %v225_v27 = vadd.f32 %v481_v16, %v224_v21  ;;  %v257_v31 = vadd.f32 %v481_v16, %v256_v22 }
 0x12e   :  { %307 = vmax.xlane.f32.xlu0 %v265_v20  ;;  %v259_v25 = vpop.f32.mrb[3].mxu1  ;;  %291 = vmax.xlane.f32.xlu1 %v233_v19  ;;  %v227_v26 = vpop.f32.mrb[3].mxu0  ;;  %v236_v28 = vadd.f32 %v533_v23, %v481_v16  ;;  %v268_v32 = vadd.f32 %v541_v24, %v481_v16 }
 0x12f   :  { %v260_v39 = vadd.f32 %v481_v16, %v259_v25  ;;  %v228_v40 = vadd.f32 %v481_v16, %v227_v26 }
 0x132   :  { %293 = vmax.xlane.f32.xlu1 %v236_v28  ;;  %287 = vmax.xlane.f32.xlu0 %v225_v27 }
 0x133   :  { %v536_v29 = vpop.f32.mrb[4].mxu0  ;;  %v544_v30 = vpop.f32.mrb[4].mxu1 }
 0x134   :  { %v240_v33 = vpop.f32.mrb[5].mxu0  ;;  %v272_v34 = vpop.f32.mrb[5].mxu1  ;;  %v249_v41 = vadd.f32 %v536_v29, %v481_v16  ;;  %v821_v47 = vadd.f32 %v544_v30, %v481_v16 }
 0x135   :  { %v537_v35 = vpop.f32.mrb[6].mxu0  ;;  %v545_v36 = vpop.f32.mrb[6].mxu1  ;;  %v241_v43 = vadd.f32 %v481_v16, %v240_v33  ;;  %v815_v45 = vadd.f32 %v481_v16, %v272_v34 }
 0x136   :  { %309 = vmax.xlane.f32.xlu1 %v268_v32  ;;  %303 = vmax.xlane.f32.xlu0 %v257_v31  ;;  %v243_v37 = vpop.f32.mrb[7].mxu0  ;;  %v275_v38 = vpop.f32.mrb[7].mxu1  ;;  %v252_v42 = vadd.f32 %v537_v35, %v481_v16  ;;  %v823_v48 = vadd.f32 %v545_v36, %v481_v16 }
 0x137   :  { %v244_v44 = vadd.f32 %v481_v16, %v243_v37  ;;  %v817_v46 = vadd.f32 %v481_v16, %v275_v38 }
 0x13a   :  { %305 = vmax.xlane.f32.xlu1 %v260_v39  ;;  %289 = vmax.xlane.f32.xlu0 %v228_v40 }
 0x13e   :  { %301 = vmax.xlane.f32.xlu1 %v252_v42  ;;  %299 = vmax.xlane.f32.xlu0 %v249_v41 }
 0x142   :  { %297 = vmax.xlane.f32.xlu1 %v244_v44  ;;  %295 = vmax.xlane.f32.xlu0 %v241_v43 }
 0x146   :  { %313 = vmax.xlane.f32.xlu1 %v817_v46  ;;  %311 = vmax.xlane.f32.xlu0 %v815_v45 }
 0x14a   :  { %317 = vmax.xlane.f32.xlu1 %v823_v48  ;;  %315 = vmax.xlane.f32.xlu0 %v821_v47 }
 0x1bb   :  { %v308_v49 = vpop.xlane.xlu0 %307  ;;  %v292_v50 = vpop.xlane.xlu1 %291 }
 0x1bc   :  { %v827_v51 = vsub.f32 %v233_v19, %v292_v50  ;;  %v829_v52 = vsub.f32 %v265_v20, %v308_v49 }
 0x1be   :  { %v339_v53 = vmul.f32 1.442695, %v827_v51  ;;  %v355_v57 = vmul.f32 1.442695, %v829_v52 }
 0x1bf   :  { %v294_v54 = vpop.xlane.xlu1 %293  ;;  %v288_v55 = vpop.xlane.xlu0 %287 }
 0x1c0   :  { %v832_v56 = vsub.f32 %v236_v28, %v294_v54  ;;  %586 = vpow2.f32 %v339_v53  ;;  %v835_v58 = vsub.f32 %v225_v27, %v288_v55 }
 0x1c2   :  { %v341_v59 = vmul.f32 1.442695, %v832_v56  ;;  %v335_v0 = vmul.f32 1.442695, %v835_v58 }
 0x1c3   :  { %v310_v60 = vpop.xlane.xlu1 %309  ;;  %v304_v61 = vpop.xlane.xlu0 %303 }
 0x1c4   :  { %588 = vpow2.f32 %v341_v59  ;;  %v838_v62 = vsub.f32 %v268_v32, %v310_v60  ;;  %v840_v63 = vsub.f32 %v257_v31, %v304_v61 }
 0x1c5   :  { %590 = vpow2.f32 %v355_v57 }
 0x1c6   :  { %v357_v1 = vmul.f32 1.442695, %v838_v62  ;;  %v351_v4 = vmul.f32 1.442695, %v840_v63 }
 0x1c7   :  { %v306_v2 = vpop.xlane.xlu1 %305  ;;  %v290_v3 = vpop.xlane.xlu0 %289 }
 0x1c8   :  { %592 = vpow2.f32 %v357_v1  ;;  %v845_v5 = vsub.f32 %v260_v39, %v306_v2  ;;  %v847_v6 = vsub.f32 %v228_v40, %v290_v3 }
 0x1c9   :  { %594 = vpow2.f32 %v335_v0 }
 0x1ca   :  { %v337_v7 = vmul.f32 1.442695, %v847_v6  ;;  %v587_v8 = vpop.eup %586  ;;  %596 = vpow2.f32 %v351_v4  ;;  %v353_v11 = vmul.f32 1.442695, %v845_v5 }
 0x1cb   :  { %v302_v9 = vpop.xlane.xlu1 %301  ;;  %v300_v10 = vpop.xlane.xlu0 %299  ;;  %371 = vadd.xlane.f32.xlu0 %v587_v8 }
 0x1cc   :  { %v851_v12 = vsub.f32 %v252_v42, %v302_v9  ;;  %v853_v13 = vsub.f32 %v249_v41, %v300_v10  ;;  %598 = vpow2.f32 %v337_v7 }
 0x1cd   :  { %600 = vpow2.f32 %v353_v11 }
 0x1ce   :  { %v589_v14 = vpop.eup %588  ;;  %v347_v15 = vmul.f32 1.442695, %v853_v13  ;;  %v349_v19 = vmul.f32 1.442695, %v851_v12 }
 0x1cf   :  { %v591_v16 = vpop.eup %590  ;;  %373 = vadd.xlane.f32.xlu1 %v589_v14  ;;  %v298_v17 = vpop.xlane.xlu1 %297 }
 0x1d0   :  { %v296_v18 = vpop.xlane.xlu0 %295  ;;  %v857_v20 = vsub.f32 %v244_v44, %v298_v17  ;;  %387 = vadd.xlane.f32.xlu0 %v591_v16  ;;  %602 = vpow2.f32 %v347_v15 }
 0x1d1   :  { %v859_v21 = vsub.f32 %v241_v43, %v296_v18  ;;  %604 = vpow2.f32 %v349_v19 }
 0x1d2   :  { %v593_v22 = vpop.eup %592  ;;  %v345_v27 = vmul.f32 1.442695, %v857_v20 }
 0x1d3   :  { %v343_v23 = vmul.f32 1.442695, %v859_v21  ;;  %v595_v24 = vpop.eup %594  ;;  %389 = vadd.xlane.f32.xlu1 %v593_v22  ;;  %v314_v25 = vpop.xlane.xlu1 %313 }
 0x1d4   :  { %v312_v26 = vpop.xlane.xlu0 %311  ;;  %v864_v28 = vsub.f32 %v817_v46, %v314_v25  ;;  %367 = vadd.xlane.f32.xlu0 %v595_v24  ;;  %v597_v30 = vpop.eup %596 }
 0x1d5   :  { %v867_v29 = vsub.f32 %v815_v45, %v312_v26  ;;  %606 = vpow2.f32 %v343_v23 }
 0x1d6   :  { %v599_v32 = vpop.eup %598  ;;  %608 = vpow2.f32 %v345_v27  ;;  %v361_v35 = vmul.f32 1.442695, %v864_v28 }
 0x1d7   :  { %v359_v31 = vmul.f32 1.442695, %v867_v29  ;;  %v318_v33 = vpop.xlane.xlu1 %317  ;;  %369 = vadd.xlane.f32.xlu1 %v599_v32  ;;  %v601_v38 = vpop.eup %600 }
 0x1d8   :  { %v316_v34 = vpop.xlane.xlu0 %315  ;;  %383 = vadd.xlane.f32.xlu0 %v597_v30  ;;  %v875_v37 = vsub.f32 %v823_v48, %v318_v33 }
 0x1d9   :  { %v872_v36 = vsub.f32 %v821_v47, %v316_v34  ;;  %610 = vpow2.f32 %v359_v31 }
 0x1da   :  { %v603_v40 = vpop.eup %602  ;;  %612 = vpow2.f32 %v361_v35  ;;  %v365_v41 = vmul.f32 1.442695, %v875_v37 }
 0x1db   :  { %v363_v39 = vmul.f32 1.442695, %v872_v36  ;;  %385 = vadd.xlane.f32.xlu1 %v601_v38  ;;  %v605_v42 = vpop.eup %604 }
 0x1dc   :  { %379 = vadd.xlane.f32.xlu0 %v603_v40 }
 0x1dd   :  { %614 = vpow2.f32 %v363_v39 }
 0x1de   :  { %616 = vpow2.f32 %v365_v41 }
 0x1df   :  { %v607_v43 = vpop.eup %606  ;;  %381 = vadd.xlane.f32.xlu1 %v605_v42 }
 0x1e0   :  { %375 = vadd.xlane.f32.xlu0 %v607_v43  ;;  %v609_v44 = vpop.eup %608 }
 0x1e3   :  { %v611_v45 = vpop.eup %610  ;;  %377 = vadd.xlane.f32.xlu1 %v609_v44 }
 0x1e4   :  { %391 = vadd.xlane.f32.xlu0 %v611_v45  ;;  %v613_v46 = vpop.eup %612 }
 0x1e7   :  { %v615_v47 = vpop.eup %614  ;;  %393 = vadd.xlane.f32.xlu1 %v613_v46 }
 0x1e8   :  { %395 = vadd.xlane.f32.xlu0 %v615_v47  ;;  %v617_v48 = vpop.eup %616 }
 0x1eb   :  { %397 = vadd.xlane.f32.xlu1 %v617_v48 }
 0x258   :  { %v372_v49 = vpop.xlane.xlu0 %371 }
 0x259   :  { %618 = vlog2.f32 %v372_v49 }
 0x25c   :  { %v374_v50 = vpop.xlane.xlu1 %373 }
 0x25d   :  { %620 = vlog2.f32 %v374_v50  ;;  %v388_v53 = vpop.xlane.xlu0 %387 }
 0x25e   :  { %622 = vlog2.f32 %v388_v53 }
 0x260   :  { %v390_v54 = vpop.xlane.xlu1 %389 }
 0x261   :  { %624 = vlog2.f32 %v390_v54  ;;  %v368_v55 = vpop.xlane.xlu0 %367 }
 0x262   :  { %626 = vlog2.f32 %v368_v55 }
 0x263   :  { %v619_v57 = vpop.eup %618 }
 0x264   :  { %v404_v59 = vmul.f32 0.6931472, %v619_v57  ;;  %v370_v60 = vpop.xlane.xlu1 %369 }
 0x265   :  { %v384_v61 = vpop.xlane.xlu0 %383  ;;  %628 = vlog2.f32 %v370_v60 }
 0x266   :  { %v433_v1 = vsub.f32 %v827_v51, %v404_v59  ;;  %630 = vlog2.f32 %v384_v61 }
 0x267   :  { %v621_v0 = vpop.eup %620 }
 0x268   :  { %v623_v2 = vpop.eup %622  ;;  %v406_v3 = vmul.f32 0.6931472, %v621_v0  ;;  %449 = vst [vmem:[#allocation8 + $0x10] sm:$0xff] %v433_v1  ;;  %v386_v7 = vpop.xlane.xlu1 %385 }
 0x269   :  { %v420_v4 = vmul.f32 0.6931472, %v623_v2  ;;  %v380_v8 = vpop.xlane.xlu0 %379  ;;  %632 = vlog2.f32 %v386_v7 }
 0x26a   :  { %v434_v9 = vsub.f32 %v832_v56, %v406_v3  ;;  %634 = vlog2.f32 %v380_v8 }
 0x26b   :  { %v625_v10 = vpop.eup %624  ;;  %v441_v11 = vsub.f32 %v829_v52, %v420_v4 }
 0x26c   :  { %v627_v14 = vpop.eup %626  ;;  %450 = vst [vmem:[#allocation8 + $0x18] sm:$0xff] %v434_v9  ;;  %v422_v15 = vmul.f32 0.6931472, %v625_v10  ;;  %v382_v51 = vpop.xlane.xlu1 %381 }
 0x26d   :  { %457 = vst [vmem:[#allocation8 + $0x50] sm:$0xff] %v441_v11  ;;  %v400_v16 = vmul.f32 0.6931472, %v627_v14  ;;  %v376_v17 = vpop.xlane.xlu0 %375  ;;  %636 = vlog2.f32 %v382_v51 }
 0x26e   :  { %v442_v18 = vsub.f32 %v838_v62, %v422_v15  ;;  %638 = vlog2.f32 %v376_v17 }
 0x26f   :  { %v431_v19 = vsub.f32 %v835_v58, %v400_v16  ;;  %v629_v22 = vpop.eup %628 }
 0x270   :  { %458 = vst [vmem:[#allocation8 + $0x58] sm:$0xff] %v442_v18  ;;  %v631_v56 = vpop.eup %630  ;;  %v402_v23 = vmul.f32 0.6931472, %v629_v22  ;;  %v378_v52 = vpop.xlane.xlu1 %377 }
 0x271   :  { %447 = vst [vmem:[#allocation8] sm:$0xff] %v431_v19  ;;  %v392_v24 = vpop.xlane.xlu0 %391  ;;  %v416_v25 = vmul.f32 0.6931472, %v631_v56  ;;  %640 = vlog2.f32 %v378_v52 }
 0x272   :  { %v432_v26 = vsub.f32 %v847_v6, %v402_v23  ;;  %642 = vlog2.f32 %v392_v24 }
 0x273   :  { %v633_v27 = vpop.eup %632  ;;  %v439_v30 = vsub.f32 %v840_v63, %v416_v25 }
 0x274   :  { %v635_v62 = vpop.eup %634  ;;  %448 = vst [vmem:[#allocation8 + $0x8] sm:$0xff] %v432_v26  ;;  %v418_v31 = vmul.f32 0.6931472, %v633_v27  ;;  %v394_v58 = vpop.xlane.xlu1 %393 }
 0x275   :  { %v396_v32 = vpop.xlane.xlu0 %395  ;;  %455 = vst [vmem:[#allocation8 + $0x40] sm:$0xff] %v439_v30  ;;  %v412_v33 = vmul.f32 0.6931472, %v635_v62  ;;  %644 = vlog2.f32 %v394_v58 }
 0x276   :  { %v440_v34 = vsub.f32 %v845_v5, %v418_v31  ;;  %646 = vlog2.f32 %v396_v32 }
 0x277   :  { %v637_v35 = vpop.eup %636  ;;  %v437_v38 = vsub.f32 %v853_v13, %v412_v33 }
 0x278   :  { %v639_v39 = vpop.eup %638  ;;  %456 = vst [vmem:[#allocation8 + $0x48] sm:$0xff] %v440_v34  ;;  %v414_v6 = vmul.f32 0.6931472, %v637_v35  ;;  %v398_v40 = vpop.xlane.xlu1 %397 }
 0x279   :  { %453 = vst [vmem:[#allocation8 + $0x30] sm:$0xff] %v437_v38  ;;  %v408_v63 = vmul.f32 0.6931472, %v639_v39  ;;  %648 = vlog2.f32 %v398_v40 }
 0x27a   :  { %v438_v41 = vsub.f32 %v851_v12, %v414_v6 }
 0x27b   :  { %v641_v42 = vpop.eup %640  ;;  %v435_v43 = vsub.f32 %v859_v21, %v408_v63 }
 0x27c   :  { %v643_v44 = vpop.eup %642  ;;  %454 = vst [vmem:[#allocation8 + $0x38] sm:$0xff] %v438_v41  ;;  %v410_v45 = vmul.f32 0.6931472, %v641_v42 }
 0x27d   :  { %451 = vst [vmem:[#allocation8 + $0x20] sm:$0xff] %v435_v43  ;;  %v424_v5 = vmul.f32 0.6931472, %v643_v44 }
 0x27e   :  { %v436_v46 = vsub.f32 %v857_v20, %v410_v45 }
 0x27f   :  { %v645_v13 = vpop.eup %644  ;;  %v443_v47 = vsub.f32 %v867_v29, %v424_v5 }
 0x280   :  { %v647_v48 = vpop.eup %646  ;;  %452 = vst [vmem:[#allocation8 + $0x28] sm:$0xff] %v436_v46  ;;  %v426_v49 = vmul.f32 0.6931472, %v645_v13 }
 0x281   :  { %459 = vst [vmem:[#allocation8 + $0x60] sm:$0xff] %v443_v47  ;;  %v428_v50 = vmul.f32 0.6931472, %v647_v48 }
 0x282   :  { %v444_v12 = vsub.f32 %v864_v28, %v426_v49 }
 0x283   :  { %v649_v53 = vpop.eup %648  ;;  %v445_v21 = vsub.f32 %v872_v36, %v428_v50 }
 0x284   :  { %460 = vst [vmem:[#allocation8 + $0x68] sm:$0xff] %v444_v12  ;;  %v430_v54 = vmul.f32 0.6931472, %v649_v53 }
 0x285   :  { %461 = vst [vmem:[#allocation8 + $0x70] sm:$0xff] %v445_v21 }
 0x286   :  { %v446_v20 = vsub.f32 %v875_v37, %v430_v54 }
 0x288   :  { %462 = vst [vmem:[#allocation8 + $0x78] sm:$0xff] %v446_v20 }
 0x289   :  { %727 = shalt.err (!%p724_p0)
}
 0x28a   :  { %s728_s26 = scalar_lea.hbm %s910_s3, 2048 }
 0x28b   :  { %p729_p1 = scmp.ne.s32.totalorder %s910_s3, %s728_s26  ;;  %p732_p2 = scmp.lt.u32.totalorder %s728_s26, %s910_s3 }
 0x28d   :  { %p734_p3 = pnand %p732_p2, %p729_p1 }
 0x28f   :  { %737 = shalt.err (!%p734_p3)
}
 0x290   :  { %s750_s4 = smov 128   ;;  %s751_s5 = smov 8  }
 0x291   :  { %474 = dma.vmem_to_hbm [thread:$0]  %s469_s22, 2048, %s910_s3, [#allocation4], %s750_s4, %s750_s4, %s751_s5  }
 0x292   :  { %742 = dma.done.wait [#allocation4], 2048  }
 0x293   :  { %743 = vsyncadd [#allocation4], 4294965248 }
 0x294   :  { %478 = vsyncpa [#allocation3], 1 }
 0x295   :  { %479 = vsyncpa [#allocation6], 1 }
 0x296   :  { %480 = vsyncpa [#allocation4], 1 }

// kernel: gcn_node_forward.7
= control target key start
LH: loop header
LB: loop body
LE: loop exit
PB: predicated region body
PF: predicated region fallthrough
CT: control target
= control target key end

     0   :  { %8 = vsyncpa [#allocation3], 0  ;;  %s767_s0 = inlined_call_operand.hbm [shape: bf16[128,128], index: 0, kind: input, shape index: {}]   ;;  %s768_s1 = inlined_call_operand.hbm [shape: bf16[128,128], index: 1, kind: input, shape index: {}]   ;;  %s769_s2 = inlined_call_operand.hbm [shape: f32[1,128], index: 2, kind: input, shape index: {}]   ;;  %s770_s3 = inlined_call_operand.hbm [shape: bf16[128,128], index: 3, kind: output, shape index: {}]  }
   0x1   :  { %9 = vsyncpa [#allocation6], 0 }
   0x2   :  { %10 = vsyncpa [#allocation4], 0  ;;  %s677_s12 = smov [#allocation5]   ;;  %s678_s14 = smov [#allocation2]  }
   0x3   :  { %s28_s13 = sshll.u32 %s677_s12, 4  ;;  %s16_s15 = sshll.u32 %s678_s14, 4  ;;  %s29_s13 = int_to_ptr.vmem [resolvable:$true] %s28_s13  ;;  %s703_s15 = int_to_ptr.vmem [resolvable:$true] %s16_s15 }
   0x4   :  { %s583_s18 = scalar_lea.hbm %s768_s1, 1024 }
   0x5   :  { %p584_p0 = scmp.ne.s32.totalorder %s768_s1, %s583_s18  ;;  %p587_p1 = scmp.lt.u32.totalorder %s583_s18, %s768_s1 }
   0x7   :  { %p589_p2 = pnand %p587_p1, %p584_p0 }
   0x9   :  { %592 = shalt.err (!%p589_p2)
}
   0xa   :  { %s593_s23 = scalar_lea.vmem %s29_s13, 1024  ;;  %p598_p4 = scmp.lt.s32.totalorder %s29_s13, %s29_s13 }
   0xb   :  { %p594_p3 = scmp.ne.s32.totalorder %s29_s13, %s593_s23  ;;  %p599_p5 = scmp.lt.s32.totalorder %s593_s23, %s593_s23 }
   0xd   :  { %p600_p6 = por %p599_p5, %p598_p4 }
   0xf   :  { %p601_p7 = pnand %p600_p6, %p594_p3 }
  0x11   :  { %604 = shalt.err (!%p601_p7)
}
  0x12   :  { %s679_s24 = smov 64   ;;  %s680_s25 = smov 4  }
  0x13   :  { %34 = dma.hbm_to_vmem [thread:$0]  %s768_s1, 1024, %s29_s13, [#allocation6], %s679_s24, %s679_s24, %s680_s25  }
  0x14   :  { %s605_s30 = scalar_lea.hbm %s767_s0, 1024 }
  0x15   :  { %p606_p8 = scmp.ne.s32.totalorder %s767_s0, %s605_s30  ;;  %p609_p9 = scmp.lt.u32.totalorder %s605_s30, %s767_s0 }
  0x17   :  { %p611_p10 = pnand %p609_p9, %p606_p8 }
  0x19   :  { %614 = shalt.err (!%p611_p10)
}
  0x1a   :  { %s615_s8 = scalar_lea.vmem %s703_s15, 1024  ;;  %p620_p12 = scmp.lt.s32.totalorder %s703_s15, %s703_s15 }
  0x1b   :  { %p616_p11 = scmp.ne.s32.totalorder %s703_s15, %s615_s8  ;;  %p621_p13 = scmp.lt.s32.totalorder %s615_s8, %s615_s8 }
  0x1d   :  { %p622_p0 = por %p621_p13, %p620_p12 }
  0x1f   :  { %p623_p1 = pnand %p622_p0, %p616_p11 }
  0x21   :  { %626 = shalt.err (!%p623_p1)
}
  0x22   :  { %22 = dma.hbm_to_vmem [thread:$0]  %s767_s0, 1024, %s703_s15, [#allocation3], %s679_s24, %s679_s24, %s680_s25  }
  0x23   :  { %s681_s10 = smov [#allocation7]   ;;  %s627_s14 = scalar_lea.hbm %s769_s2, 16 }
  0x24   :  { %s41_s11 = sshll.u32 %s681_s10, 4  ;;  %p628_p2 = scmp.ne.s32.totalorder %s769_s2, %s627_s14  ;;  %s42_s11 = int_to_ptr.vmem [resolvable:$true] %s41_s11 }
  0x25   :  { %p631_p3 = scmp.lt.u32.totalorder %s627_s14, %s769_s2 }
  0x27   :  { %p633_p4 = pnand %p631_p3, %p628_p2 }
  0x29   :  { %636 = shalt.err (!%p633_p4)
}
  0x2a   :  { %s637_s20 = scalar_lea.vmem %s42_s11, 16  ;;  %s641_s0 = scalar_lea.vmem %s42_s11, 32 }
  0x2b   :  { %p638_p5 = scmp.ne.s32.totalorder %s42_s11, %s637_s20  ;;  %p642_p6 = scmp.lt.s32.totalorder %s42_s11, %s42_s11 }
  0x2c   :  { %p643_p7 = scmp.lt.s32.totalorder %s641_s0, %s637_s20 }
  0x2e   :  { %p644_p8 = por %p643_p7, %p642_p6 }
  0x30   :  { %p645_p9 = pnand %p644_p8, %p638_p5 }
  0x32   :  { %648 = shalt.err (!%p645_p9)
}
  0x33   :  { %44 = dma.hbm_to_vmem [thread:$0]  %s769_s2, 16, %s42_s11, [#allocation6]  }
  0x34   :  { %671 = dma.done.wait [#allocation3], 1024  }
  0x35   :  { %672 = vsyncadd [#allocation3], 4294966272 }
  0x36   :  { %673 = dma.done.wait [#allocation6], 1040  }
  0x37   :  { %674 = vsyncadd [#allocation6], 4294966256  ;;  %v567_v0 = vld [vmem:[#allocation5] sm:$0xff]   ;;  %v568_v1 = vld [vmem:[#allocation5 + $0x8] sm:$0xff]   ;;  %s682_s2 = smov [#allocation8]  }
  0x38   :  { %513 = vmatprep.subr.bf16.mxu0 %v567_v0  ;;  %545 = vmatprep.subr.bf16.mxu1 %v567_v0  ;;  %v569_v2 = vld [vmem:[#allocation5 + $0x10] sm:$0xff]   ;;  %v570_v3 = vld [vmem:[#allocation5 + $0x18] sm:$0xff]   ;;  %v575_v4 = vld [vmem:[#allocation2] sm:$0xff]   ;;  %s388_s22 = sshll.u32 %s682_s2, 4  ;;  %s389_s22 = int_to_ptr.vmem [resolvable:$true] %s388_s22 }
  0x39   :  { %514 = vmatpush3.bf16.msra.mxu0 %v567_v0  ;;  %553 = vmatpush3.bf16.msra.mxu1 %v567_v0  ;;  %v576_v5 = vld [vmem:[#allocation2 + $0x20] sm:$0xff]   ;;  %v572_v7 = vld [vmem:[#allocation5 + $0x28] sm:$0xff]   ;;  %v573_v8 = vld [vmem:[#allocation5 + $0x30] sm:$0xff]   ;;  %s649_s23 = scalar_lea.vmem %s389_s22, 1024  ;;  %p654_p11 = scmp.lt.s32.totalorder %s389_s22, %s389_s22 }
  0x3a   :  { %515 = vmatprep.subr.bf16.mxu0 %v568_v1  ;;  %546 = vmatprep.subr.bf16.mxu1 %v568_v1  ;;  %v571_v6 = vld [vmem:[#allocation5 + $0x20] sm:$0xff]   ;;  %v574_v9 = vld [vmem:[#allocation5 + $0x38] sm:$0xff]   ;;  %v577_v10 = vld [vmem:[#allocation2 + $0x8] sm:$0xff]   ;;  %p650_p10 = scmp.ne.s32.totalorder %s389_s22, %s649_s23  ;;  %p655_p12 = scmp.lt.s32.totalorder %s649_s23, %s649_s23 }
  0x3b   :  { %529 = vmatprep.mubr.bf16.mxu0 %v575_v4  ;;  %537 = vmatprep.mubr.bf16.mxu1 %v576_v5  ;;  %v578_v11 = vld [vmem:[#allocation2 + $0x28] sm:$0xff]   ;;  %v579_v12 = vld [vmem:[#allocation2 + $0x10] sm:$0xff]   ;;  %v581_v14 = vld [vmem:[#allocation2 + $0x18] sm:$0xff]  }
  0x3c   :  { %v580_v13 = vld [vmem:[#allocation2 + $0x30] sm:$0xff]   ;;  %v582_v15 = vld [vmem:[#allocation2 + $0x38] sm:$0xff]   ;;  %v401_v16 = vld [vmem:[#allocation7] ss:$0 sm:$0xff]  ;;  %p656_p13 = por %p655_p12, %p654_p11 }
  0x3d   :  { %516 = vmatpush3.bf16.msra.mxu0 %v568_v1  ;;  %554 = vmatpush3.bf16.msra.mxu1 %v568_v1 }
  0x3e   :  { %517 = vmatprep.subr.bf16.mxu0 %v569_v2  ;;  %547 = vmatprep.subr.bf16.mxu1 %v569_v2  ;;  %p657_p0 = pnand %p656_p13, %p650_p10 }
  0x41   :  { %518 = vmatpush3.bf16.msra.mxu0 %v569_v2  ;;  %555 = vmatpush3.bf16.msra.mxu1 %v569_v2 }
  0x42   :  { %519 = vmatprep.subr.bf16.mxu0 %v570_v3  ;;  %548 = vmatprep.subr.bf16.mxu1 %v570_v3 }
  0x45   :  { %520 = vmatpush3.bf16.msra.mxu0 %v570_v3  ;;  %556 = vmatpush3.bf16.msra.mxu1 %v570_v3 }
  0x46   :  { %521 = vmatprep.subr.bf16.mxu0 %v571_v6  ;;  %549 = vmatprep.subr.bf16.mxu1 %v571_v6 }
  0x49   :  { %522 = vmatpush3.bf16.msra.mxu0 %v571_v6  ;;  %557 = vmatpush3.bf16.msra.mxu1 %v571_v6 }
  0x4a   :  { %523 = vmatprep.subr.bf16.mxu0 %v572_v7  ;;  %550 = vmatprep.subr.bf16.mxu1 %v572_v7 }
  0x4d   :  { %524 = vmatpush3.bf16.msra.mxu0 %v572_v7  ;;  %558 = vmatpush3.bf16.msra.mxu1 %v572_v7 }
  0x4e   :  { %525 = vmatprep.subr.bf16.mxu0 %v573_v8  ;;  %551 = vmatprep.subr.bf16.mxu1 %v573_v8 }
  0x51   :  { %526 = vmatpush3.bf16.msra.mxu0 %v573_v8  ;;  %559 = vmatpush3.bf16.msra.mxu1 %v573_v8 }
  0x52   :  { %527 = vmatprep.subr.bf16.mxu0 %v574_v9  ;;  %552 = vmatprep.subr.bf16.mxu1 %v574_v9 }
  0x55   :  { %528 = vmatpush3.bf16.msra.mxu0 %v574_v9  ;;  %560 = vmatpush3.bf16.msra.mxu1 %v574_v9 }
  0x58   :  { %530 = vmatmul.mubr.bf16.vlgmr.msra.gmra.mrb[0].mxu0 %v577_v10  ;;  %538 = vmatmul.mubr.bf16.vlgmr.msra.gmra.mrb[0].mxu1 %v578_v11 }
  0x59   :  { %533 = vmatprep.mubr.bf16.mxu0 %v579_v12  ;;  %541 = vmatprep.mubr.bf16.mxu1 %v580_v13 }
  0x60   :  { %534 = vmatmul.mubr.bf16.gmra.mrb[4].mxu0 %v581_v14  ;;  %542 = vmatmul.mubr.bf16.gmra.mrb[4].mxu1 %v582_v15 }
 0x12b   :  { %v531_v17 = vpop.f32.mrb[0].mxu0  ;;  %v539_v18 = vpop.f32.mrb[0].mxu1 }
 0x12c   :  { %v233_v19 = vadd.f32 %v531_v17, %v401_v16  ;;  %v265_v20 = vadd.f32 %v539_v18, %v401_v16  ;;  %v224_v21 = vpop.f32.mrb[1].mxu0  ;;  %v256_v22 = vpop.f32.mrb[1].mxu1 }
 0x12d   :  { %v225_v23 = vadd.f32 %v401_v16, %v224_v21  ;;  %v257_v24 = vadd.f32 %v401_v16, %v256_v22  ;;  %v532_v25 = vpop.f32.mrb[2].mxu0  ;;  %v540_v26 = vpop.f32.mrb[2].mxu1 }
 0x12e   :  { %v236_v27 = vadd.f32 %v532_v25, %v401_v16  ;;  %v268_v28 = vadd.f32 %v540_v26, %v401_v16  ;;  %v227_v29 = vpop.f32.mrb[3].mxu0  ;;  %v259_v30 = vpop.f32.mrb[3].mxu1  ;;  %v289_v33 = vmax.f32 %v233_v19, 0.0  ;;  %v297_v34 = vmax.f32 %v265_v20, 0.0 }
 0x12f   :  { %v228_v31 = vadd.f32 %v401_v16, %v227_v29  ;;  %v260_v32 = vadd.f32 %v401_v16, %v259_v30  ;;  %v287_v37 = vmax.f32 %v225_v23, 0.0  ;;  %v295_v38 = vmax.f32 %v257_v24, 0.0 }
 0x130   :  { %v290_v35 = vmax.f32 %v236_v27, 0.0  ;;  %v298_v36 = vmax.f32 %v268_v28, 0.0 }
 0x131   :  { %v288_v39 = vmax.f32 %v228_v31, 0.0  ;;  %v296_v40 = vmax.f32 %v260_v32, 0.0 }
 0x132   :  { %v458_v41 = vpack.c.bf16 %v290_v35, %v289_v33  ;;  %v478_v42 = vpack.c.bf16 %v298_v36, %v297_v34 }
 0x133   :  { %v453_v43 = vpack.c.bf16 %v288_v39, %v287_v37  ;;  %v473_v44 = vpack.c.bf16 %v296_v40, %v295_v38  ;;  %v535_v45 = vpop.f32.mrb[4].mxu0  ;;  %v543_v46 = vpop.f32.mrb[4].mxu1 }
 0x134   :  { %490 = vst [vmem:[#allocation8 + $0x8] sm:$0xff] %v458_v41   ;;  %494 = vst [vmem:[#allocation8 + $0x28] sm:$0xff] %v478_v42   ;;  %v249_v47 = vadd.f32 %v535_v45, %v401_v16  ;;  %v281_v48 = vadd.f32 %v543_v46, %v401_v16  ;;  %v240_v49 = vpop.f32.mrb[5].mxu0  ;;  %v272_v50 = vpop.f32.mrb[5].mxu1 }
 0x135   :  { %454 = vst [vmem:[#allocation8] sm:$0xff] %v453_v43   ;;  %493 = vst [vmem:[#allocation8 + $0x20] sm:$0xff] %v473_v44   ;;  %v241_v51 = vadd.f32 %v401_v16, %v240_v49  ;;  %v273_v52 = vadd.f32 %v401_v16, %v272_v50  ;;  %v536_v53 = vpop.f32.mrb[6].mxu0  ;;  %v544_v54 = vpop.f32.mrb[6].mxu1 }
 0x136   :  { %v252_v55 = vadd.f32 %v536_v53, %v401_v16  ;;  %v284_v56 = vadd.f32 %v544_v54, %v401_v16  ;;  %v243_v57 = vpop.f32.mrb[7].mxu0  ;;  %v275_v58 = vpop.f32.mrb[7].mxu1  ;;  %v293_v61 = vmax.f32 %v249_v47, 0.0  ;;  %v301_v62 = vmax.f32 %v281_v48, 0.0 }
 0x137   :  { %v244_v59 = vadd.f32 %v401_v16, %v243_v57  ;;  %v276_v60 = vadd.f32 %v401_v16, %v275_v58  ;;  %v291_v1 = vmax.f32 %v241_v51, 0.0  ;;  %v299_v2 = vmax.f32 %v273_v52, 0.0 }
 0x138   :  { %v294_v63 = vmax.f32 %v252_v55, 0.0  ;;  %v302_v0 = vmax.f32 %v284_v56, 0.0 }
 0x139   :  { %v292_v3 = vmax.f32 %v244_v59, 0.0  ;;  %v300_v4 = vmax.f32 %v276_v60, 0.0 }
 0x13a   :  { %v468_v5 = vpack.c.bf16 %v294_v63, %v293_v61  ;;  %v488_v6 = vpack.c.bf16 %v302_v0, %v301_v62 }
 0x13b   :  { %v463_v7 = vpack.c.bf16 %v292_v3, %v291_v1  ;;  %v483_v8 = vpack.c.bf16 %v300_v4, %v299_v2 }
 0x13c   :  { %492 = vst [vmem:[#allocation8 + $0x18] sm:$0xff] %v468_v5   ;;  %496 = vst [vmem:[#allocation8 + $0x38] sm:$0xff] %v488_v6  }
 0x13d   :  { %491 = vst [vmem:[#allocation8 + $0x10] sm:$0xff] %v463_v7   ;;  %495 = vst [vmem:[#allocation8 + $0x30] sm:$0xff] %v483_v8  }
 0x13e   :  { %660 = shalt.err (!%p657_p0)
}
 0x13f   :  { %s661_s28 = scalar_lea.hbm %s770_s3, 1024 }
 0x140   :  { %p662_p1 = scmp.ne.s32.totalorder %s770_s3, %s661_s28  ;;  %p665_p2 = scmp.lt.u32.totalorder %s661_s28, %s770_s3 }
 0x142   :  { %p667_p3 = pnand %p665_p2, %p662_p1 }
 0x144   :  { %670 = shalt.err (!%p667_p3)
}
 0x145   :  { %394 = dma.vmem_to_hbm [thread:$0]  %s389_s22, 1024, %s770_s3, [#allocation4], %s679_s24, %s679_s24, %s680_s25  }
 0x146   :  { %675 = dma.done.wait [#allocation4], 1024  }
 0x147   :  { %676 = vsyncadd [#allocation4], 4294966272 }
 0x148   :  { %398 = vsyncpa [#allocation3], 1 }
 0x149   :  { %399 = vsyncpa [#allocation6], 1 }
 0x14a   :  { %400 = vsyncpa [#allocation4], 1 }

// kernel: gcn_node_forward.6
= control target key start
LH: loop header
LB: loop body
LE: loop exit
PB: predicated region body
PF: predicated region fallthrough
CT: control target
= control target key end

     0   :  { %8 = vsyncpa [#allocation3], 0  ;;  %s751_s0 = inlined_call_operand.hbm [shape: bf16[128,128], index: 0, kind: input, shape index: {}]   ;;  %s752_s1 = inlined_call_operand.hbm [shape: bf16[128,128], index: 1, kind: input, shape index: {}]   ;;  %s753_s2 = inlined_call_operand.hbm [shape: f32[1,128], index: 2, kind: input, shape index: {}]   ;;  %s754_s3 = inlined_call_operand.hbm [shape: bf16[128,128], index: 3, kind: output, shape index: {}]  }
   0x1   :  { %9 = vsyncpa [#allocation6], 0 }
   0x2   :  { %10 = vsyncpa [#allocation4], 0  ;;  %s661_s12 = smov [#allocation5]   ;;  %s662_s14 = smov [#allocation2]  }
   0x3   :  { %s28_s13 = sshll.u32 %s661_s12, 4  ;;  %s16_s15 = sshll.u32 %s662_s14, 4  ;;  %s29_s13 = int_to_ptr.vmem [resolvable:$true] %s28_s13  ;;  %s687_s15 = int_to_ptr.vmem [resolvable:$true] %s16_s15 }
   0x4   :  { %s567_s18 = scalar_lea.hbm %s752_s1, 1024 }
   0x5   :  { %p568_p0 = scmp.ne.s32.totalorder %s752_s1, %s567_s18  ;;  %p571_p1 = scmp.lt.u32.totalorder %s567_s18, %s752_s1 }
   0x7   :  { %p573_p2 = pnand %p571_p1, %p568_p0 }
   0x9   :  { %576 = shalt.err (!%p573_p2)
}
   0xa   :  { %s577_s23 = scalar_lea.vmem %s29_s13, 1024  ;;  %p582_p4 = scmp.lt.s32.totalorder %s29_s13, %s29_s13 }
   0xb   :  { %p578_p3 = scmp.ne.s32.totalorder %s29_s13, %s577_s23  ;;  %p583_p5 = scmp.lt.s32.totalorder %s577_s23, %s577_s23 }
   0xd   :  { %p584_p6 = por %p583_p5, %p582_p4 }
   0xf   :  { %p585_p7 = pnand %p584_p6, %p578_p3 }
  0x11   :  { %588 = shalt.err (!%p585_p7)
}
  0x12   :  { %s663_s24 = smov 64   ;;  %s664_s25 = smov 4  }
  0x13   :  { %34 = dma.hbm_to_vmem [thread:$0]  %s752_s1, 1024, %s29_s13, [#allocation6], %s663_s24, %s663_s24, %s664_s25  }
  0x14   :  { %s589_s30 = scalar_lea.hbm %s751_s0, 1024 }
  0x15   :  { %p590_p8 = scmp.ne.s32.totalorder %s751_s0, %s589_s30  ;;  %p593_p9 = scmp.lt.u32.totalorder %s589_s30, %s751_s0 }
  0x17   :  { %p595_p10 = pnand %p593_p9, %p590_p8 }
  0x19   :  { %598 = shalt.err (!%p595_p10)
}
  0x1a   :  { %s599_s8 = scalar_lea.vmem %s687_s15, 1024  ;;  %p604_p12 = scmp.lt.s32.totalorder %s687_s15, %s687_s15 }
  0x1b   :  { %p600_p11 = scmp.ne.s32.totalorder %s687_s15, %s599_s8  ;;  %p605_p13 = scmp.lt.s32.totalorder %s599_s8, %s599_s8 }
  0x1d   :  { %p606_p0 = por %p605_p13, %p604_p12 }
  0x1f   :  { %p607_p1 = pnand %p606_p0, %p600_p11 }
  0x21   :  { %610 = shalt.err (!%p607_p1)
}
  0x22   :  { %22 = dma.hbm_to_vmem [thread:$0]  %s751_s0, 1024, %s687_s15, [#allocation3], %s663_s24, %s663_s24, %s664_s25  }
  0x23   :  { %s665_s10 = smov [#allocation7]   ;;  %s611_s14 = scalar_lea.hbm %s753_s2, 16 }
  0x24   :  { %s41_s11 = sshll.u32 %s665_s10, 4  ;;  %p612_p2 = scmp.ne.s32.totalorder %s753_s2, %s611_s14  ;;  %s42_s11 = int_to_ptr.vmem [resolvable:$true] %s41_s11 }
  0x25   :  { %p615_p3 = scmp.lt.u32.totalorder %s611_s14, %s753_s2 }
  0x27   :  { %p617_p4 = pnand %p615_p3, %p612_p2 }
  0x29   :  { %620 = shalt.err (!%p617_p4)
}
  0x2a   :  { %s621_s20 = scalar_lea.vmem %s42_s11, 16  ;;  %s625_s0 = scalar_lea.vmem %s42_s11, 32 }
  0x2b   :  { %p622_p5 = scmp.ne.s32.totalorder %s42_s11, %s621_s20  ;;  %p626_p6 = scmp.lt.s32.totalorder %s42_s11, %s42_s11 }
  0x2c   :  { %p627_p7 = scmp.lt.s32.totalorder %s625_s0, %s621_s20 }
  0x2e   :  { %p628_p8 = por %p627_p7, %p626_p6 }
  0x30   :  { %p629_p9 = pnand %p628_p8, %p622_p5 }
  0x32   :  { %632 = shalt.err (!%p629_p9)
}
  0x33   :  { %44 = dma.hbm_to_vmem [thread:$0]  %s753_s2, 16, %s42_s11, [#allocation6]  }
  0x34   :  { %655 = dma.done.wait [#allocation3], 1024  }
  0x35   :  { %656 = vsyncadd [#allocation3], 4294966272 }
  0x36   :  { %657 = dma.done.wait [#allocation6], 1040  }
  0x37   :  { %658 = vsyncadd [#allocation6], 4294966256  ;;  %v551_v0 = vld [vmem:[#allocation5] sm:$0xff]   ;;  %v552_v1 = vld [vmem:[#allocation5 + $0x8] sm:$0xff]   ;;  %s666_s2 = smov [#allocation8]  }
  0x38   :  { %497 = vmatprep.subr.bf16.mxu0 %v551_v0  ;;  %529 = vmatprep.subr.bf16.mxu1 %v551_v0  ;;  %v553_v2 = vld [vmem:[#allocation5 + $0x10] sm:$0xff]   ;;  %v554_v3 = vld [vmem:[#allocation5 + $0x18] sm:$0xff]   ;;  %v559_v4 = vld [vmem:[#allocation2] sm:$0xff]   ;;  %s372_s22 = sshll.u32 %s666_s2, 4  ;;  %s373_s22 = int_to_ptr.vmem [resolvable:$true] %s372_s22 }
  0x39   :  { %498 = vmatpush3.bf16.msra.mxu0 %v551_v0  ;;  %537 = vmatpush3.bf16.msra.mxu1 %v551_v0  ;;  %v560_v5 = vld [vmem:[#allocation2 + $0x20] sm:$0xff]   ;;  %v556_v7 = vld [vmem:[#allocation5 + $0x28] sm:$0xff]   ;;  %v557_v8 = vld [vmem:[#allocation5 + $0x30] sm:$0xff]   ;;  %s633_s23 = scalar_lea.vmem %s373_s22, 1024  ;;  %p638_p11 = scmp.lt.s32.totalorder %s373_s22, %s373_s22 }
  0x3a   :  { %499 = vmatprep.subr.bf16.mxu0 %v552_v1  ;;  %530 = vmatprep.subr.bf16.mxu1 %v552_v1  ;;  %v555_v6 = vld [vmem:[#allocation5 + $0x20] sm:$0xff]   ;;  %v558_v9 = vld [vmem:[#allocation5 + $0x38] sm:$0xff]   ;;  %v561_v10 = vld [vmem:[#allocation2 + $0x8] sm:$0xff]   ;;  %p634_p10 = scmp.ne.s32.totalorder %s373_s22, %s633_s23  ;;  %p639_p12 = scmp.lt.s32.totalorder %s633_s23, %s633_s23 }
  0x3b   :  { %513 = vmatprep.mubr.bf16.mxu0 %v559_v4  ;;  %521 = vmatprep.mubr.bf16.mxu1 %v560_v5  ;;  %v562_v11 = vld [vmem:[#allocation2 + $0x28] sm:$0xff]   ;;  %v563_v12 = vld [vmem:[#allocation2 + $0x10] sm:$0xff]   ;;  %v565_v14 = vld [vmem:[#allocation2 + $0x18] sm:$0xff]  }
  0x3c   :  { %v564_v13 = vld [vmem:[#allocation2 + $0x30] sm:$0xff]   ;;  %v566_v15 = vld [vmem:[#allocation2 + $0x38] sm:$0xff]   ;;  %v385_v17 = vld [vmem:[#allocation7] ss:$0 sm:$0xff]  ;;  %p640_p13 = por %p639_p12, %p638_p11 }
  0x3d   :  { %500 = vmatpush3.bf16.msra.mxu0 %v552_v1  ;;  %538 = vmatpush3.bf16.msra.mxu1 %v552_v1 }
  0x3e   :  { %501 = vmatprep.subr.bf16.mxu0 %v553_v2  ;;  %531 = vmatprep.subr.bf16.mxu1 %v553_v2  ;;  %p641_p0 = pnand %p640_p13, %p634_p10 }
  0x41   :  { %502 = vmatpush3.bf16.msra.mxu0 %v553_v2  ;;  %539 = vmatpush3.bf16.msra.mxu1 %v553_v2 }
  0x42   :  { %503 = vmatprep.subr.bf16.mxu0 %v554_v3  ;;  %532 = vmatprep.subr.bf16.mxu1 %v554_v3 }
  0x45   :  { %504 = vmatpush3.bf16.msra.mxu0 %v554_v3  ;;  %540 = vmatpush3.bf16.msra.mxu1 %v554_v3 }
  0x46   :  { %505 = vmatprep.subr.bf16.mxu0 %v555_v6  ;;  %533 = vmatprep.subr.bf16.mxu1 %v555_v6 }
  0x49   :  { %506 = vmatpush3.bf16.msra.mxu0 %v555_v6  ;;  %541 = vmatpush3.bf16.msra.mxu1 %v555_v6 }
  0x4a   :  { %507 = vmatprep.subr.bf16.mxu0 %v556_v7  ;;  %534 = vmatprep.subr.bf16.mxu1 %v556_v7 }
  0x4d   :  { %508 = vmatpush3.bf16.msra.mxu0 %v556_v7  ;;  %542 = vmatpush3.bf16.msra.mxu1 %v556_v7 }
  0x4e   :  { %509 = vmatprep.subr.bf16.mxu0 %v557_v8  ;;  %535 = vmatprep.subr.bf16.mxu1 %v557_v8 }
  0x51   :  { %510 = vmatpush3.bf16.msra.mxu0 %v557_v8  ;;  %543 = vmatpush3.bf16.msra.mxu1 %v557_v8 }
  0x52   :  { %511 = vmatprep.subr.bf16.mxu0 %v558_v9  ;;  %536 = vmatprep.subr.bf16.mxu1 %v558_v9 }
  0x55   :  { %512 = vmatpush3.bf16.msra.mxu0 %v558_v9  ;;  %544 = vmatpush3.bf16.msra.mxu1 %v558_v9 }
  0x58   :  { %514 = vmatmul.mubr.bf16.vlgmr.msra.gmra.mrb[0].mxu0 %v561_v10  ;;  %522 = vmatmul.mubr.bf16.vlgmr.msra.gmra.mrb[0].mxu1 %v562_v11 }
  0x59   :  { %517 = vmatprep.mubr.bf16.mxu0 %v563_v12  ;;  %525 = vmatprep.mubr.bf16.mxu1 %v564_v13 }
  0x60   :  { %518 = vmatmul.mubr.bf16.gmra.mrb[4].mxu0 %v565_v14  ;;  %526 = vmatmul.mubr.bf16.gmra.mrb[4].mxu1 %v566_v15 }
 0x12b   :  { %v515_v16 = vpop.f32.mrb[0].mxu0  ;;  %v523_v18 = vpop.f32.mrb[0].mxu1 }
 0x12c   :  { %v224_v19 = vpop.f32.mrb[1].mxu0  ;;  %v256_v20 = vpop.f32.mrb[1].mxu1  ;;  %v233_v23 = vadd.f32 %v515_v16, %v385_v17  ;;  %v265_v24 = vadd.f32 %v523_v18, %v385_v17 }
 0x12d   :  { %v516_v21 = vpop.f32.mrb[2].mxu0  ;;  %v524_v22 = vpop.f32.mrb[2].mxu1  ;;  %v225_v29 = vadd.f32 %v385_v17, %v224_v19  ;;  %v257_v30 = vadd.f32 %v385_v17, %v256_v20 }
 0x12e   :  { %v236_v25 = vadd.f32 %v516_v21, %v385_v17  ;;  %v268_v26 = vadd.f32 %v524_v22, %v385_v17  ;;  %v227_v27 = vpop.f32.mrb[3].mxu0  ;;  %v259_v28 = vpop.f32.mrb[3].mxu1 }
 0x12f   :  { %v228_v31 = vadd.f32 %v385_v17, %v227_v27  ;;  %v260_v32 = vadd.f32 %v385_v17, %v259_v28 }
 0x130   :  { %v442_v33 = vpack.c.bf16 %v236_v25, %v233_v23  ;;  %v462_v34 = vpack.c.bf16 %v268_v26, %v265_v24 }
 0x131   :  { %v437_v35 = vpack.c.bf16 %v228_v31, %v225_v29  ;;  %v457_v36 = vpack.c.bf16 %v260_v32, %v257_v30 }
 0x132   :  { %474 = vst [vmem:[#allocation8 + $0x8] sm:$0xff] %v442_v33   ;;  %478 = vst [vmem:[#allocation8 + $0x28] sm:$0xff] %v462_v34  }
 0x133   :  { %438 = vst [vmem:[#allocation8] sm:$0xff] %v437_v35   ;;  %477 = vst [vmem:[#allocation8 + $0x20] sm:$0xff] %v457_v36   ;;  %v519_v37 = vpop.f32.mrb[4].mxu0  ;;  %v527_v38 = vpop.f32.mrb[4].mxu1 }
 0x134   :  { %v240_v39 = vpop.f32.mrb[5].mxu0  ;;  %v272_v40 = vpop.f32.mrb[5].mxu1  ;;  %v249_v43 = vadd.f32 %v519_v37, %v385_v17  ;;  %v281_v44 = vadd.f32 %v527_v38, %v385_v17 }
 0x135   :  { %v520_v41 = vpop.f32.mrb[6].mxu0  ;;  %v528_v42 = vpop.f32.mrb[6].mxu1  ;;  %v241_v49 = vadd.f32 %v385_v17, %v240_v39  ;;  %v273_v50 = vadd.f32 %v385_v17, %v272_v40 }
 0x136   :  { %v252_v45 = vadd.f32 %v520_v41, %v385_v17  ;;  %v284_v46 = vadd.f32 %v528_v42, %v385_v17  ;;  %v243_v47 = vpop.f32.mrb[7].mxu0  ;;  %v275_v48 = vpop.f32.mrb[7].mxu1 }
 0x137   :  { %v244_v51 = vadd.f32 %v385_v17, %v243_v47  ;;  %v276_v52 = vadd.f32 %v385_v17, %v275_v48 }
 0x138   :  { %v452_v53 = vpack.c.bf16 %v252_v45, %v249_v43  ;;  %v472_v54 = vpack.c.bf16 %v284_v46, %v281_v44 }
 0x139   :  { %v447_v55 = vpack.c.bf16 %v244_v51, %v241_v49  ;;  %v467_v56 = vpack.c.bf16 %v276_v52, %v273_v50 }
 0x13a   :  { %476 = vst [vmem:[#allocation8 + $0x18] sm:$0xff] %v452_v53   ;;  %480 = vst [vmem:[#allocation8 + $0x38] sm:$0xff] %v472_v54  }
 0x13b   :  { %475 = vst [vmem:[#allocation8 + $0x10] sm:$0xff] %v447_v55   ;;  %479 = vst [vmem:[#allocation8 + $0x30] sm:$0xff] %v467_v56  }
 0x13c   :  { %644 = shalt.err (!%p641_p0)
}
 0x13d   :  { %s645_s28 = scalar_lea.hbm %s754_s3, 1024 }
 0x13e   :  { %p646_p1 = scmp.ne.s32.totalorder %s754_s3, %s645_s28  ;;  %p649_p2 = scmp.lt.u32.totalorder %s645_s28, %s754_s3 }
 0x140   :  { %p651_p3 = pnand %p649_p2, %p646_p1 }
 0x142   :  { %654 = shalt.err (!%p651_p3)
}
 0x143   :  { %378 = dma.vmem_to_hbm [thread:$0]  %s373_s22, 1024, %s754_s3, [#allocation4], %s663_s24, %s663_s24, %s664_s25  }
 0x144   :  { %659 = dma.done.wait [#allocation4], 1024  }
 0x145   :  { %660 = vsyncadd [#allocation4], 4294966272 }
 0x146   :  { %382 = vsyncpa [#allocation3], 1 }
 0x147   :  { %383 = vsyncpa [#allocation6], 1 }
 0x148   :  { %384 = vsyncpa [#allocation4], 1 }

</bundles_post_ra>
